<compile_context>
chip_gen: v6e
topology: v6e:2x2x1
jax: 0.10.0
libtpu: 0.0.40
codegen_flags: <defaults>
</compile_context>

<pallas_src>
import functools

import jax
import jax.numpy as jnp
from jax.experimental import pallas as pl
from jax.experimental.pallas import tpu as pltpu

BN_EPS = 1e-5


def tnetfc_kernel(x_ref, w_ref, sb_ref, o_ref, *, batch_size, matmul_dtype):
    # x_ref: (Bp, Din) f32, w_ref: (Din, TN) f32, sb_ref: (2, TN) f32 = [gamma; beta]
    x = x_ref[...].astype(matmul_dtype)
    w = w_ref[...].astype(matmul_dtype)
    y = jnp.dot(x, w, preferred_element_type=jnp.float32)       # (Bp, TN) f32, MXU

    # Batch statistics in one pass. Zero-padded batch rows give y == 0, which
    # contributes nothing to either sum, so dividing by the true batch size is exact.
    inv_b = jnp.float32(1.0 / batch_size)
    mean = jnp.sum(y, axis=0, keepdims=True) * inv_b             # (1, TN)
    mean_sq = jnp.sum(y * y, axis=0, keepdims=True) * inv_b      # E[y^2]
    var = mean_sq - mean * mean                                  # biased (training-mode) var

    gamma = sb_ref[0:1, :]
    beta = sb_ref[1:2, :]
    scale = gamma * jax.lax.rsqrt(var + BN_EPS)                  # rsqrt -> EUP slot
    shift = beta - mean * scale

    # Fused BN affine + ReLU: a single multiply-add pass over the (Bp, TN) tile.
    o_ref[...] = jnp.maximum(y * scale + shift, 0.0).astype(o_ref.dtype)


def _round_up(n, m):
    return ((n + m - 1) // m) * m


def tnetfc_forward(x, w, b, gamma, beta, *, tn=128, matmul_dtype=jnp.bfloat16):
    """relu(batchnorm_train(x @ w + b)) -- the bias cancels under BN mean subtraction,
    so it is accepted for API parity but never touched by the kernel."""
    del b  # mathematically cancelled by the batch-mean subtraction (dead work)
    B, din = x.shape
    dout = w.shape[1]

    bp = _round_up(max(B, 8), 8)        # sublane-aligned batch
    tn = _round_up(tn, 128)             # lane-dense feature tile (128 v5e / 256 ok on v6e+)
    dpad = _round_up(dout, tn)

    # Zero-pad: padded rows/columns contribute nothing and are sliced away below.
    xp = jnp.pad(x.astype(jnp.float32), ((0, bp - B), (0, 0)))
    wp = jnp.pad(w.astype(jnp.float32), ((0, 0), (0, dpad - dout)))
    sb = jnp.pad(jnp.stack([gamma, beta]).astype(jnp.float32),
                 ((0, 0), (0, dpad - dout)))                     # (2, dpad)

    kernel = functools.partial(
        tnetfc_kernel, batch_size=B, matmul_dtype=matmul_dtype)

    out = pl.pallas_call(
        kernel,
        out_shape=jax.ShapeDtypeStruct((bp, dpad), jnp.float32),
        grid=(dpad // tn,),
        in_specs=[
            pl.BlockSpec((bp, din), lambda j: (0, 0)),   # x reused by every feature tile
            pl.BlockSpec((din, tn), lambda j: (0, j)),   # W feature tile
            pl.BlockSpec((2, tn), lambda j: (0, j)),     # [gamma; beta] feature tile
        ],
        out_specs=pl.BlockSpec((bp, tn), lambda j: (0, j)),
        compiler_params=pltpu.CompilerParams(
            # Feature tiles are independent (BN reduces over batch only) ->
            # shard the grid across both TensorCores on megacore parts (v7x).
            dimension_semantics=("parallel",),
        ),
    )(xp, wp, sb)

    return out[:B, :dout]


def init_params(key, input_dim, output_dim):
    # Mirror PyTorch nn.Linear default init: U(-1/sqrt(in), 1/sqrt(in))
    k_w, k_b = jax.random.split(key)
    bound = 1.0 / jnp.sqrt(jnp.float32(input_dim))
    w = jax.random.uniform(k_w, (input_dim, output_dim), jnp.float32, -bound, bound)
    b = jax.random.uniform(k_b, (output_dim,), jnp.float32, -bound, bound)
    # BatchNorm1d: gamma=1, beta=0
    gamma = jnp.ones((output_dim,), jnp.float32)
    beta = jnp.zeros((output_dim,), jnp.float32)
    return w, b, gamma, beta


if __name__ == "__main__":
    key = jax.random.PRNGKey(0)
    k_x, k_p = jax.random.split(key)

    B, input_dim, output_dim = 8, 32, 64
    x = jax.random.normal(k_x, (B, input_dim), jnp.float32)
    w, b, gamma, beta = init_params(k_p, input_dim, output_dim)

    out = tnetfc_forward(x, w, b, gamma, beta)
    jax.block_until_ready(out)

    # Reference 1: same matmul precision as the kernel (bf16 operands, f32 accumulate),
    # full training-mode BN incl. the (cancelled) bias -- tight tolerance.
    y = jnp.dot(x.astype(jnp.bfloat16), w.astype(jnp.bfloat16),
                preferred_element_type=jnp.float32) + b
    mean = y.mean(axis=0, keepdims=True)
    var = ((y - mean) ** 2).mean(axis=0, keepdims=True)
    ref = jnp.maximum((y - mean) * jax.lax.rsqrt(var + BN_EPS) * gamma + beta, 0.0)
    assert jnp.allclose(out, ref, atol=1e-4, rtol=1e-4), "mismatch vs bf16-matched reference"

    # Reference 2: pure-f32 PyTorch-equivalent forward; loose tolerance covers the
    # bf16 matmul operands used on the MXU.
    yf = x @ w + b
    meanf = yf.mean(axis=0, keepdims=True)
    varf = ((yf - meanf) ** 2).mean(axis=0, keepdims=True)
    reff = jnp.maximum((yf - meanf) / jnp.sqrt(varf + BN_EPS) * gamma + beta, 0.0)
    assert jnp.allclose(out, reff, atol=5e-2, rtol=5e-2), "mismatch vs f32 reference"

    print("KERNEL_OK")
</pallas_src>

<mosaic_0001>
module attributes {stable_mosaic.version = 11 : i64} {
  func.func @tnetfc_kernel(%arg0: i32, %arg1: memref<8x32xf32, #tpu.memory_space<vmem>>, %arg2: memref<32x128xf32, #tpu.memory_space<vmem>>, %arg3: memref<2x128xf32, #tpu.memory_space<vmem>>, %arg4: memref<8x128xf32, #tpu.memory_space<vmem>>) attributes {dimension_semantics = [#tpu.dimension_semantics<parallel>], iteration_bounds = array<i64: 1>, scalar_prefetch = 0 : i64, scratch_operands = 0 : i64, tpu.core_type = #tpu.core_type<tc>, window_params = [{pipeline_mode = #tpu.pipeline_mode<synchronous>, transform_indices = @transform_0, window_bounds = array<i64: 8, 32>}, {transform_indices = @transform_1, window_bounds = array<i64: 32, 128>}, {transform_indices = @transform_2, window_bounds = array<i64: 2, 128>}, {transform_indices = @transform_3, window_bounds = array<i64: 8, 128>}]} {
    %c0 = arith.constant 0 : index
    %c0_0 = arith.constant 0 : index
    %0 = vector.load %arg1[%c0, %c0_0] : memref<8x32xf32, #tpu.memory_space<vmem>>, vector<8x32xf32>
    %1 = arith.truncf %0 : vector<8x32xf32> to vector<8x32xbf16>
    %c0_1 = arith.constant 0 : index
    %c0_2 = arith.constant 0 : index
    %2 = vector.load %arg2[%c0_1, %c0_2] : memref<32x128xf32, #tpu.memory_space<vmem>>, vector<32x128xf32>
    %3 = arith.truncf %2 : vector<32x128xf32> to vector<32x128xbf16>
    %cst = arith.constant dense<0.000000e+00> : vector<8x128xf32>
    %4 = tpu.matmul %1, %3, %cst {dimension_numbers = #tpu.dot_dimension_numbers<[1], [0], [0], [1], [0, 0, 1, 1], [], []>} : vector<8x32xbf16>, vector<32x128xbf16>, vector<8x128xf32> -> vector<8x128xf32>
    %cst_3 = arith.constant dense<0.000000e+00> : vector<128xf32>
    %5 = vector.multi_reduction <add>, %4, %cst_3 [0] : vector<8x128xf32> to vector<128xf32>
    %6 = vector.shape_cast %5 : vector<128xf32> to vector<1x128xf32>
    %cst_4 = arith.constant 1.250000e-01 : f32
    %7 = vector.broadcast %cst_4 : f32 to vector<1x128xf32>
    %8 = arith.mulf %6, %7 : vector<1x128xf32>
    %9 = arith.mulf %4, %4 : vector<8x128xf32>
    %cst_5 = arith.constant dense<0.000000e+00> : vector<128xf32>
    %10 = vector.multi_reduction <add>, %9, %cst_5 [0] : vector<8x128xf32> to vector<128xf32>
    %11 = vector.shape_cast %10 : vector<128xf32> to vector<1x128xf32>
    %cst_6 = arith.constant 1.250000e-01 : f32
    %12 = vector.broadcast %cst_6 : f32 to vector<1x128xf32>
    %13 = arith.mulf %11, %12 : vector<1x128xf32>
    %14 = arith.mulf %8, %8 : vector<1x128xf32>
    %15 = arith.subf %13, %14 : vector<1x128xf32>
    %c0_7 = arith.constant 0 : index
    %c0_8 = arith.constant 0 : index
    %16 = vector.load %arg3[%c0_7, %c0_8] : memref<2x128xf32, #tpu.memory_space<vmem>>, vector<1x128xf32>
    %c1 = arith.constant 1 : index
    %c0_9 = arith.constant 0 : index
    %17 = vector.load %arg3[%c1, %c0_9] : memref<2x128xf32, #tpu.memory_space<vmem>>, vector<1x128xf32>
    %cst_10 = arith.constant 9.99999974E-6 : f32
    %18 = vector.broadcast %cst_10 : f32 to vector<1x128xf32>
    %19 = arith.addf %15, %18 : vector<1x128xf32>
    %20 = math.rsqrt %19 : vector<1x128xf32>
    %21 = arith.mulf %16, %20 : vector<1x128xf32>
    %22 = arith.mulf %8, %21 : vector<1x128xf32>
    %23 = arith.subf %17, %22 : vector<1x128xf32>
    %24 = vector.broadcast %21 : vector<1x128xf32> to vector<8x128xf32>
    %25 = arith.mulf %4, %24 : vector<8x128xf32>
    %26 = vector.broadcast %23 : vector<1x128xf32> to vector<8x128xf32>
    %27 = arith.addf %25, %26 : vector<8x128xf32>
    %cst_11 = arith.constant 0.000000e+00 : f32
    %28 = vector.broadcast %cst_11 : f32 to vector<8x128xf32>
    %29 = arith.maximumf %27, %28 : vector<8x128xf32>
    %c0_12 = arith.constant 0 : index
    %c0_13 = arith.constant 0 : index
    %30 = vector.load %arg4[%c0_12, %c0_13] : memref<8x128xf32, #tpu.memory_space<vmem>>, vector<8x128xf32>
    tpu.vector_store %arg4[%c0_12, %c0_13], %29 {strides = array<i32>} : memref<8x128xf32, #tpu.memory_space<vmem>>, vector<8x128xf32>,
    return
  }
  func.func @transform_0(%arg0: i32) -> (i32, i32) {
    %c0_i32 = arith.constant 0 : i32
    %c0_i32_0 = arith.constant 0 : i32
    %c0_i32_1 = arith.constant 0 : i32
    return %c0_i32, %c0_i32_0 : i32, i32
  }
  func.func @transform_1(%arg0: i32) -> (i32, i32) {
    %c0_i32 = arith.constant 0 : i32
    %c0_i32_0 = arith.constant 0 : i32
    return %c0_i32, %arg0 : i32, i32
  }
  func.func @transform_2(%arg0: i32) -> (i32, i32) {
    %c0_i32 = arith.constant 0 : i32
    %c0_i32_0 = arith.constant 0 : i32
    return %c0_i32, %arg0 : i32, i32
  }
  func.func @transform_3(%arg0: i32) -> (i32, i32) {
    %c0_i32 = arith.constant 0 : i32
    %c0_i32_0 = arith.constant 0 : i32
    return %c0_i32, %arg0 : i32, i32
  }
}

</mosaic_0001>

<bundles_post_ra>
// kernel: tpu_custom_call.1
= control target key start
LH: loop header
LB: loop body
LE: loop exit
PB: predicated region body
PF: predicated region fallthrough
CT: control target
= control target key end

     0   :  { %8 = vsyncpa [#allocation3], 0  ;;  %s275_s0 = inlined_call_operand.hbm [shape: f32[8,32], index: 0, kind: input, shape index: {}]   ;;  %s276_s1 = inlined_call_operand.hbm [shape: f32[32,128], index: 1, kind: input, shape index: {}]   ;;  %s277_s2 = inlined_call_operand.vmem [shape: f32[2,128], index: 2, kind: input, shape index: {}]   ;;  %s278_s3 = inlined_call_operand.hbm [shape: f32[8,128], index: 3, kind: output, shape index: {}]  }
   0x1   :  { %9 = vsyncpa [#allocation6], 0 }
   0x2   :  { %10 = vsyncpa [#allocation4], 0  ;;  %s233_s12 = smov [#allocation2]   ;;  %s234_s14 = smov [#allocation5]  }
   0x3   :  { %s17_s13 = sshll.u32 %s233_s12, 4  ;;  %s26_s15 = sshll.u32 %s234_s14, 4  ;;  %s18_s13 = int_to_ptr.vmem [resolvable:$true] %s17_s13  ;;  %s27_s15 = int_to_ptr.vmem [resolvable:$true] %s26_s15 }
   0x4   :  { %s175_s16 = scalar_lea.vmem %s18_s13, 128  ;;  %p180_p1 = scmp.lt.s32.totalorder %s18_s13, %s18_s13 }
   0x5   :  { %p176_p0 = scmp.ne.s32.totalorder %s18_s13, %s175_s16  ;;  %p181_p2 = scmp.lt.s32.totalorder %s175_s16, %s175_s16 }
   0x7   :  { %p182_p3 = por %p181_p2, %p180_p1 }
   0x9   :  { %p183_p4 = pnand %p182_p3, %p176_p0 }
   0xb   :  { %186 = shalt.err (!%p183_p4)
}
   0xc   :  { %20 = dma.hbm_to_vmem [thread:$0]  %s275_s0, 128, %s18_s13, [#allocation3]  }
   0xd   :  { %s195_s19 = scalar_lea.vmem %s27_s15, 512  ;;  %p200_p6 = scmp.lt.s32.totalorder %s27_s15, %s27_s15 }
   0xe   :  { %p196_p5 = scmp.ne.s32.totalorder %s27_s15, %s195_s19  ;;  %p201_p7 = scmp.lt.s32.totalorder %s195_s19, %s195_s19 }
  0x10   :  { %p202_p8 = por %p201_p7, %p200_p6 }
  0x12   :  { %p203_p9 = pnand %p202_p8, %p196_p5 }
  0x14   :  { %206 = shalt.err (!%p203_p9)
}
  0x15   :  { %s235_s20 = smov 128   ;;  %s236_s21 = smov 8  }
  0x16   :  { %32 = dma.hbm_to_vmem [thread:$0]  %s276_s1, 512, %s27_s15, [#allocation6], %s235_s20, %s235_s20, %s236_s21  }
  0x17   :  { %227 = dma.done.wait [#allocation3], 128  }
  0x18   :  { %228 = vsyncadd [#allocation3], 4294967168 }
  0x19   :  { %229 = dma.done.wait [#allocation6], 512  }
  0x1a   :  { %230 = vsyncadd [#allocation6], 4294966784  ;;  %v237_v0 = vmov 0.0   ;;  %vm238_vm0 = vmmov 0   ;;  %v46_v1 = vld [vmem:[#allocation5 + $0x10] sm:$0xff]  ;;  %v47_v2 = vld [vmem:[#allocation5 + $0x18] sm:$0xff]  ;;  %v118_v31 = vlaneseq }
  0x1b   :  { %150 = vmatprep.subr.bf16.mxu0 %v237_v0  ;;  %154 = vmatprep.mubr.msk.bf16.mxu0 %vm238_vm0, %v237_v0  ;;  %v44_v3 = vld [vmem:[#allocation5] sm:$0xff]  ;;  %v49_v4 = vpack.c.bf16 %v47_v2, %v46_v1  ;;  %v45_v5 = vld [vmem:[#allocation5 + $0x8] sm:$0xff]  ;;  %v42_v7 = vld [vmem:[#allocation2] sm:$0xff]  ;;  %vm50_vm1 = vcmask 261120   ;;  %s239_s26 = smov [#allocation7]  }
  0x1c   :  { %v48_v6 = vpack.c.bf16 %v45_v5, %v44_v3  ;;  %v43_v8 = vpack.c.bf16 %v42_v7, %v42_v7  ;;  %v119_v32 = vshrl.u32 %v118_v31, 7  ;;  %v111_v33 = vld [vmem:[%s277_s2] sm:$0x1]  ;;  %v112_v37 = vld [vmem:[%s277_s2 + $0x1] sm:$0x1]  ;;  %s136_s27 = sshll.u32 %s239_s26, 4  ;;  %s137_s27 = int_to_ptr.vmem [resolvable:$true] %s136_s27 }
  0x1d   :  { %151 = vmatpush3.bf16.msra.mxu0 %v49_v4  ;;  %s207_s28 = scalar_lea.vmem %s137_s27, 128  ;;  %p212_p11 = scmp.lt.s32.totalorder %s137_s27, %s137_s27 }
  0x1e   :  { %152 = vmatprep.subr.bf16.mxu0 %v237_v0  ;;  %v120_v34 = vsub.s32 0, %v119_v32  ;;  %p208_p10 = scmp.ne.s32.totalorder %s137_s27, %s207_s28  ;;  %p213_p12 = scmp.lt.s32.totalorder %s207_s28, %s207_s28 }
  0x20   :  { %p214_p13 = por %p213_p12, %p212_p11 }
  0x21   :  { %153 = vmatpush3.bf16.msra.mxu0 %v48_v6 }
  0x22   :  { %p215_p0 = pnand %p214_p13, %p208_p10 }
  0x24   :  { %155 = vmatmul.mubr.msk.bf16.vlgmr.msra.gmra.mxu0 %vm50_vm1, %v43_v8 }
  0xe4   :  { %v88_v9 = vpop.f32.mrf.mxu0 }
  0xe5   :  { %v94_v10 = vrot.slane %v88_v9, 4  ;;  %v101_v11 = vmul.f32 %v88_v9, %v88_v9 }
  0xe6   :  { %v156_v12 = vpop.f32.mrf.mxu0 }
  0xe7   :  { %v95_v13 = vadd.f32 %v94_v10, %v88_v9  ;;  %v102_v14 = vrot.slane %v101_v11, 4 }
  0xe8   :  { %v91_v15 = vpop.f32.mrf.mxu0 }
  0xe9   :  { %v96_v16 = vrot.slane %v95_v13, 2  ;;  %v103_v17 = vadd.f32 %v102_v14, %v101_v11 }
  0xea   :  { %v157_v18 = vpop.f32.mrf.mxu0 }
  0xeb   :  { %v97_v19 = vadd.f32 %v96_v16, %v95_v13  ;;  %v104_v20 = vrot.slane %v103_v17, 2 }
  0xed   :  { %v98_v21 = vrot.slane %v97_v19, 1  ;;  %v105_v22 = vadd.f32 %v104_v20, %v103_v17 }
  0xef   :  { %v99_v23 = vadd.f32 %v98_v21, %v97_v19  ;;  %v106_v24 = vrot.slane %v105_v22, 1 }
  0xf1   :  { %v100_v25 = vmul.f32 0.125, %v99_v23  ;;  %v107_v26 = vadd.f32 %v106_v24, %v105_v22 }
  0xf3   :  { %v108_v27 = vmul.f32 0.125, %v107_v26  ;;  %v109_v28 = vmul.f32 %v100_v25, %v100_v25 }
  0xf5   :  { %v110_v29 = vsub.f32 %v108_v27, %v109_v28 }
  0xf7   :  { %v113_v30 = vadd.f32 1e-05, %v110_v29 }
  0xf9   :  { %165 = vrsqrt.f32 %v113_v30 }
 0x106   :  { %v166_v35 = vpop.eup %165 }
 0x107   :  { %v115_v36 = vmul.f32 %v166_v35, %v111_v33 }
 0x109   :  { %v121_v38 = vrot.slane %v115_v36, %v120_v34  ;;  %v116_v39 = vmul.f32 %v115_v36, %v100_v25 }
 0x10b   :  { %v117_v40 = vsub.f32 %v112_v37, %v116_v39  ;;  %v122_v41 = vmul.f32 %v121_v38, %v88_v9 }
 0x10d   :  { %v126_v42 = vrot.slane %v117_v40, %v120_v34 }
 0x10f   :  { %v127_v43 = vadd.f32 %v126_v42, %v122_v41 }
 0x111   :  { %v128_v44 = vmax.f32 %v127_v43, 0.0 }
 0x113   :  { %129 = vst [vmem:[#allocation7] sm:$0xff] %v128_v44 }
 0x114   :  { %218 = shalt.err (!%p215_p0)
}
 0x115   :  { %139 = dma.vmem_to_hbm [thread:$0]  %s137_s27, 128, %s278_s3, [#allocation4]  }
 0x116   :  { %231 = dma.done.wait [#allocation4], 128  }
 0x117   :  { %232 = vsyncadd [#allocation4], 4294967168 }
 0x118   :  { %143 = vsyncpa [#allocation3], 1 }
 0x119   :  { %144 = vsyncpa [#allocation6], 1 }
 0x11a   :  { %145 = vsyncpa [#allocation4], 1 }

</bundles_post_ra>
